<compile_context>
chip_gen: v7x
topology: tpu7x:2x2x1
jax: 0.10.0
libtpu: 0.0.40
codegen_flags: <defaults>
</compile_context>

<pallas_src>
import math

import jax
import jax.numpy as jnp
from jax.experimental import pallas as pl
from jax.experimental.pallas import tpu as pltpu


def _concat_last_kernel(img_ref, txt_ref, o_ref):
    # Promote in-register, build the full-width tile, one unmasked lane-dense
    # store of the whole output block.
    img = img_ref[...].astype(o_ref.dtype)
    txt = txt_ref[...].astype(o_ref.dtype)
    o_ref[...] = jnp.concatenate([img, txt], axis=-1)


def pallas_concat_last(image, text):
    """Pallas equivalent of torch.concat([image, text], dim=-1)."""
    assert image.shape[:-1] == text.shape[:-1], "leading dims must match"
    lead = image.shape[:-1]
    d1, d2 = image.shape[-1], text.shape[-1]
    out_dtype = jnp.result_type(image.dtype, text.dtype)

    m = int(math.prod(lead)) if lead else 1
    img2 = image.reshape(m, d1)
    txt2 = text.reshape(m, d2)

    # Row tile: biggest power-of-two multiple of 8 dividing m, capped at 1024
    # rows (double-buffered in+out tiles stay well under the scoped-VMEM
    # default even for wide features).  Otherwise fall back to one block
    # covering the whole array, which always satisfies the (8,128) rule.
    if m % 8 == 0:
        tm = 8
        while tm * 2 <= min(m, 1024) and m % (tm * 2) == 0:
            tm *= 2
    else:
        tm = m
    grid = (m // tm,)

    out = pl.pallas_call(
        _concat_last_kernel,
        out_shape=jax.ShapeDtypeStruct((m, d1 + d2), out_dtype),
        grid=grid,
        in_specs=[
            pl.BlockSpec((tm, d1), lambda i: (i, 0)),
            pl.BlockSpec((tm, d2), lambda i: (i, 0)),
        ],
        out_specs=pl.BlockSpec((tm, d1 + d2), lambda i: (i, 0)),
        compiler_params=pltpu.CompilerParams(
            dimension_semantics=("parallel",)),
    )(img2, txt2)
    return out.reshape(*lead, d1 + d2)


if __name__ == "__main__":
    # Shapes consistent with what feeds JointConcatenated in the original
    # pipeline: image features (B, T, width=128), text features (B, T, 13).
    B, T, D_IMG, D_TXT = 2, 8, 128, 13

    key = jax.random.PRNGKey(0)
    ki, kt = jax.random.split(key)
    image = jax.random.normal(ki, (B, T, D_IMG), jnp.float32)
    text = jax.random.normal(kt, (B, T, D_TXT), jnp.float32)

    fwd = jax.jit(pallas_concat_last)
    out = jax.block_until_ready(fwd(image, text))

    ref = jnp.concatenate([image, text], axis=-1)
    assert out.shape == (B, T, D_IMG + D_TXT)
    assert jnp.allclose(out, ref)
    print("KERNEL_OK")
</pallas_src>

<mosaic_0001>
module attributes {stable_mosaic.version = 11 : i64} {
  func.func @_concat_last_kernel(%arg0: i32, %arg1: memref<16x128xf32, #tpu.memory_space<vmem>>, %arg2: memref<16x13xf32, #tpu.memory_space<vmem>>, %arg3: memref<16x141xf32, #tpu.memory_space<vmem>>) attributes {dimension_semantics = [#tpu.dimension_semantics<parallel>], iteration_bounds = array<i64: 1>, scalar_prefetch = 0 : i64, scratch_operands = 0 : i64, tpu.core_type = #tpu.core_type<tc>, window_params = [{transform_indices = @transform_0, window_bounds = array<i64: 16, 128>}, {transform_indices = @transform_1, window_bounds = array<i64: 16, 13>}, {transform_indices = @transform_2, window_bounds = array<i64: 16, 141>}]} {
    %c0 = arith.constant 0 : index
    %c0_0 = arith.constant 0 : index
    %0 = vector.load %arg1[%c0, %c0_0] : memref<16x128xf32, #tpu.memory_space<vmem>>, vector<16x128xf32>
    %c0_1 = arith.constant 0 : index
    %c0_2 = arith.constant 0 : index
    %1 = vector.load %arg2[%c0_1, %c0_2] : memref<16x13xf32, #tpu.memory_space<vmem>>, vector<16x13xf32>
    %2 = tpu.concatenate %0, %1 in 1 : vector<16x128xf32>, vector<16x13xf32> -> vector<16x141xf32>
    %c0_3 = arith.constant 0 : index
    %c0_4 = arith.constant 0 : index
    %3 = vector.load %arg3[%c0_3, %c0_4] : memref<16x141xf32, #tpu.memory_space<vmem>>, vector<16x141xf32>
    tpu.vector_store %arg3[%c0_3, %c0_4], %2 {strides = array<i32>} : memref<16x141xf32, #tpu.memory_space<vmem>>, vector<16x141xf32>,
    return
  }
  func.func @transform_0(%arg0: i32) -> (i32, i32) {
    %c0_i32 = arith.constant 0 : i32
    %c0_i32_0 = arith.constant 0 : i32
    return %arg0, %c0_i32 : i32, i32
  }
  func.func @transform_1(%arg0: i32) -> (i32, i32) {
    %c0_i32 = arith.constant 0 : i32
    %c0_i32_0 = arith.constant 0 : i32
    return %arg0, %c0_i32 : i32, i32
  }
  func.func @transform_2(%arg0: i32) -> (i32, i32) {
    %c0_i32 = arith.constant 0 : i32
    %c0_i32_0 = arith.constant 0 : i32
    return %arg0, %c0_i32 : i32, i32
  }
}

</mosaic_0001>

<bundles_post_ra>
// kernel: pallas_concat_last.1
= control target key start
LH: loop header
LB: loop body
LE: loop exit
PB: predicated region body
PF: predicated region fallthrough
CT: control target
= control target key end

     0   :  { %7 = vsyncpa [#allocation3], 0  ;;  %s204_s0 = inlined_call_operand.hbm [shape: f32[16,128], index: 0, kind: input, shape index: {}]   ;;  %s205_s1 = inlined_call_operand.hbm [shape: f32[16,13], index: 1, kind: input, shape index: {}]   ;;  %s206_s2 = inlined_call_operand.hbm [shape: f32[16,141], index: 2, kind: output, shape index: {}]  }
   0x1   :  { %8 = vsyncpa [#allocation6], 0 }
   0x2   :  { %9 = vsyncpa [#allocation4], 0  ;;  %s146_s9 = smov [#allocation2]   ;;  %s74_s13 = scalar_lea.hbm %s204_s0, 256 }
   0x3   :  { %s15_s10 = sshll.u32 %s146_s9, 4  ;;  %p75_p0 = scmp.ne.s32.totalorder %s204_s0, %s74_s13  ;;  %s16_s10 = int_to_ptr.vmem [resolvable:$true] %s15_s10 }
   0x4   :  { %p78_p1 = scmp.lt.u32.totalorder %s74_s13, %s204_s0 }
   0x6   :  { %p80_p2 = pnand %p78_p1, %p75_p0 }
   0x8   :  { %83 = shalt.err (!%p80_p2)
}
   0x9   :  { %s84_s18 = scalar_lea.vmem %s16_s10, 256  ;;  %p89_p4 = scmp.lt.s32.totalorder %s16_s10, %s16_s10 }
   0xa   :  { %p85_p3 = scmp.ne.s32.totalorder %s16_s10, %s84_s18  ;;  %p90_p5 = scmp.lt.s32.totalorder %s84_s18, %s84_s18 }
   0xc   :  { %p91_p6 = por %p90_p5, %p89_p4 }
   0xe   :  { %p92_p7 = pnand %p91_p6, %p85_p3 }
  0x10   :  { %95 = shalt.err (!%p92_p7)
}
  0x11   :  { %s147_s19 = smov 128   ;;  %s148_s20 = smov 8  }
  0x12   :  { %21 = dma.hbm_to_vmem [thread:$0]  %s204_s0, 256, %s16_s10, [#allocation3], %s147_s19, %s147_s19, %s148_s20  }
  0x13   :  { %s149_s23 = smov [#allocation5]   ;;  %s96_s27 = scalar_lea.hbm %s205_s1, 256 }
  0x14   :  { %s27_s24 = sshll.u32 %s149_s23, 4  ;;  %p97_p8 = scmp.ne.s32.totalorder %s205_s1, %s96_s27  ;;  %s28_s24 = int_to_ptr.vmem [resolvable:$true] %s27_s24 }
  0x15   :  { %p100_p9 = scmp.lt.u32.totalorder %s96_s27, %s205_s1 }
  0x17   :  { %p102_p10 = pnand %p100_p9, %p97_p8 }
  0x19   :  { %105 = shalt.err (!%p102_p10)
}
  0x1a   :  { %s106_s4 = scalar_lea.vmem %s28_s24, 256  ;;  %p111_p12 = scmp.lt.s32.totalorder %s28_s24, %s28_s24 }
  0x1b   :  { %p107_p11 = scmp.ne.s32.totalorder %s28_s24, %s106_s4  ;;  %p112_p13 = scmp.lt.s32.totalorder %s106_s4, %s106_s4 }
  0x1d   :  { %p113_p0 = por %p112_p13, %p111_p12 }
  0x1f   :  { %p114_p1 = pnand %p113_p0, %p107_p11 }
  0x21   :  { %117 = shalt.err (!%p114_p1)
}
  0x22   :  { %33 = dma.hbm_to_vmem [thread:$0]  %s205_s1, 256, %s28_s24, [#allocation6], %s147_s19, %s147_s19, %s148_s20  }
  0x23   :  { %140 = dma.done.wait [#allocation3], 256  }
  0x24   :  { %141 = vsyncadd [#allocation3], 4294967040 }
  0x25   :  { %142 = dma.done.wait [#allocation6], 256  }
  0x26   :  { %143 = vsyncadd [#allocation6], 4294967040  ;;  %s150_s6 = smov [#allocation7]   ;;  %vm45_vm0 = vcmask 105472   ;;  %v40_v0 = vld [vmem:[#allocation2] sm:$0xff]  ;;  %v42_v1 = vld [vmem:[#allocation5] sm:$0xff] }
  0x27   :  { %s54_s7 = sshll.u32 %s150_s6, 4  ;;  %v41_v2 = vld [vmem:[#allocation2 + $0x8] sm:$0xff]  ;;  %44 = vst [vmem:[#allocation7] sm:$0xff] %v40_v0  ;;  %46 = vst.msk [vmem:[#allocation7 + $0x8] sm:$0xff] %vm45_vm0, %v42_v1  ;;  %v43_v3 = vld [vmem:[#allocation5 + $0x8] sm:$0xff]  ;;  %s55_s7 = int_to_ptr.vmem [resolvable:$true] %s54_s7 }
  0x28   :  { %47 = vst [vmem:[#allocation7 + $0x10] sm:$0xff] %v41_v2  ;;  %48 = vst.msk [vmem:[#allocation7 + $0x18] sm:$0xff] %vm45_vm0, %v43_v3  ;;  %s118_s8 = scalar_lea.vmem %s55_s7, 512  ;;  %p123_p3 = scmp.lt.s32.totalorder %s55_s7, %s55_s7 }
  0x29   :  { %p119_p2 = scmp.ne.s32.totalorder %s55_s7, %s118_s8  ;;  %p124_p4 = scmp.lt.s32.totalorder %s118_s8, %s118_s8 }
  0x2b   :  { %p125_p5 = por %p124_p4, %p123_p3 }
  0x2d   :  { %p126_p6 = pnand %p125_p5, %p119_p2 }
  0x2f   :  { %129 = shalt.err (!%p126_p6)
}
  0x30   :  { %s130_s10 = scalar_lea.hbm %s206_s2, 512 }
  0x31   :  { %p131_p7 = scmp.ne.s32.totalorder %s206_s2, %s130_s10  ;;  %p134_p8 = scmp.lt.u32.totalorder %s130_s10, %s206_s2 }
  0x33   :  { %p136_p9 = pnand %p134_p8, %p131_p7 }
  0x35   :  { %139 = shalt.err (!%p136_p9)
}
  0x36   :  { %s151_s15 = smov 256   ;;  %s152_s16 = smov 16  }
  0x37   :  { %60 = dma.vmem_to_hbm [thread:$0]  %s55_s7, 512, %s206_s2, [#allocation4], %s151_s15, %s151_s15, %s152_s16  }
  0x38   :  { %144 = dma.done.wait [#allocation4], 512  }
  0x39   :  { %145 = vsyncadd [#allocation4], 4294966784 }
  0x3a   :  { %64 = vsyncpa [#allocation3], 1 }
  0x3b   :  { %65 = vsyncpa [#allocation6], 1 }
  0x3c   :  { %66 = vsyncpa [#allocation4], 1 }

</bundles_post_ra>
